<compile_context>
chip_gen: v7x
topology: tpu7x:2x2x1
jax: 0.10.0
libtpu: 0.0.40
codegen_flags: <defaults>
</compile_context>

<pallas_src>
import functools

import jax
import jax.numpy as jnp
import numpy as np
from jax import lax
from jax.experimental import pallas as pl
from jax.experimental.pallas import tpu as pltpu


_LANE = 128
_SUBLANE_MULT = 32            # multiple of 8 (f32), 16 (bf16), 32 (int8/fp8)
_MAX_T = 512                  # max rows gathered per grid step
_ONEHOT_MAX_V = 2048          # one-hot MXU path only for small vocabularies
_MAX_PREFETCH_TOKENS = 32768  # cap on scalar-prefetched index vector per call
_BUF_BYTES_TARGET = 2 * 1024 * 1024  # ~2 MiB per staging/output buffer copy


def _round_up(x, m):
    return (x + m - 1) // m * m


def _vmem_capacity_bytes():
    try:
        return int(pltpu.get_tpu_info().vmem_capacity_bytes)
    except Exception:
        return 64 * 1024 * 1024   # conservative fallback (v7x per-core VMEM)


# ----------------------------------------------------------------------------
# forward(): identity pass-through of the precomputed embedding tensor.
# The PyTorch module literally does `return input`; a copy kernel would only
# add HBM read+write traffic, so we return the input unchanged.
# ----------------------------------------------------------------------------
def interpretable_embedding_forward(x):
    return x


# ----------------------------------------------------------------------------
# Fast path: whole table resident in VMEM, one-hot (T,V) x (V,Dp) MXU gather.
# ----------------------------------------------------------------------------
def _make_onehot_kernel(T, V):
    def kernel(idx_ref, table_ref, o_ref):
        idx = idx_ref[...]                                    # (T, 1) int32
        iota = lax.broadcasted_iota(jnp.int32, (T, V), 1)     # (T, V)
        onehot = (idx == iota).astype(jnp.float32)            # exact 0/1
        acc = jnp.dot(onehot, table_ref[...].astype(jnp.float32),
                      preferred_element_type=jnp.float32)
        o_ref[...] = acc.astype(o_ref.dtype)
    return kernel


def _gather_onehot_vmem(table, flat_idx, *, T, V, Dp, vmem_cap):
    n_pad = flat_idx.shape[0]
    num_blocks = n_pad // T
    itemsize = jnp.dtype(table.dtype).itemsize
    idx2d = flat_idx.reshape(n_pad, 1)

    vmem_need = (V * Dp * itemsize            # resident table
                 + 4 * T * Dp * itemsize      # double-buffered out + headroom
                 + 4 << 20)
    vmem_limit = int(min(vmem_cap // 2, max(16 << 20, vmem_need)))

    cost = pl.CostEstimate(
        flops=2 * n_pad * V * Dp,
        transcendentals=0,
        bytes_accessed=V * Dp * itemsize + n_pad * Dp * itemsize + n_pad * 4,
    )

    return pl.pallas_call(
        _make_onehot_kernel(T, V),
        out_shape=jax.ShapeDtypeStruct((n_pad, Dp), table.dtype),
        grid_spec=pltpu.PrefetchScalarGridSpec(
            num_scalar_prefetch=0,
            grid=(num_blocks,),
            in_specs=[
                pl.BlockSpec((T, 1), lambda i: (i, 0)),    # indices (VMEM)
                pl.BlockSpec((V, Dp), lambda i: (0, 0)),   # table resident in VMEM
            ],
            out_specs=pl.BlockSpec((T, Dp), lambda i: (i, 0)),
        ),
        compiler_params=pltpu.CompilerParams(
            # Blocks are independent -> v7x megacore may shard them; measured
            # no-op on single-core v5e/v6e.
            dimension_semantics=("parallel",),
            vmem_limit_bytes=vmem_limit,
        ),
        cost_estimate=cost,
    )(idx2d, table)


# ----------------------------------------------------------------------------
# Streaming path: table stays in HBM, manual row DMAs, cross-block double
# buffering of the gather (block i+1's rows are fetched during block i).
# ----------------------------------------------------------------------------
def _make_stream_kernel(T, unroll=8):
    def kernel(idx_ref, table_ref, o_ref, row_buf, sems):
        blk = pl.program_id(0)
        nblk = pl.num_programs(0)
        cur = lax.rem(blk, 2)
        nxt = 1 - cur

        def issue(block_id, slot):
            base = block_id * T

            def body(t, carry):
                r = idx_ref[base + t]
                pltpu.make_async_copy(
                    table_ref.at[r], row_buf.at[slot, t], sems.at[slot, t]
                ).start()
                return carry

            lax.fori_loop(0, T, body, 0, unroll=unroll)

        # Prime the pipeline for the very first block.
        @pl.when(blk == 0)
        def _():
            issue(0, 0)

        # Prefetch the NEXT block's rows before waiting on this block's rows
        # (also keeps all SMEM index reads ahead of any .wait()).
        @pl.when(blk + 1 < nblk)
        def _():
            issue(blk + 1, nxt)

        # Wait for this block's rows.  NOTE: the source ref used to rebuild the
        # wait descriptor is irrelevant -- wait only consumes the per-row byte
        # count on that semaphore, and every table row has the same size.
        def wait_body(t, carry):
            pltpu.make_async_copy(
                table_ref.at[0], row_buf.at[cur, t], sems.at[cur, t]
            ).wait()
            return carry

        lax.fori_loop(0, T, wait_body, 0, unroll=unroll)

        # One dense, lane/sublane-aligned (T, Dp) store.
        o_ref[...] = row_buf[cur]

    return kernel


def _gather_stream_hbm(table, flat_idx, *, T, Dp):
    n_pad = flat_idx.shape[0]
    dtype = table.dtype
    itemsize = jnp.dtype(dtype).itemsize

    # Chunk so the scalar-prefetched 1-D index vector (which pads to
    # next_pow2(4N) bytes in SMEM) never exhausts SMEM for very long sequences.
    chunk_rows = max(T, (_MAX_PREFETCH_TOKENS // T) * T)

    # TODO(synk): for sub-32-bit tables the per-row VMEM destination is a
    # packed partial sublane; consider the pack-2xbf16->u32 bitcast trick if
    # the strided row DMAs show up as a bottleneck.
    outs = []
    for start in range(0, n_pad, chunk_rows):
        end = min(start + chunk_rows, n_pad)
        rows = end - start                    # always a multiple of T
        num_blocks = rows // T
        idx_chunk = flat_idx[start:end]

        cost = pl.CostEstimate(
            flops=0,
            transcendentals=0,
            bytes_accessed=2 * rows * Dp * itemsize + rows * 4,
        )

        out = pl.pallas_call(
            _make_stream_kernel(T),
            out_shape=jax.ShapeDtypeStruct((rows, Dp), dtype),
            grid_spec=pltpu.PrefetchScalarGridSpec(
                num_scalar_prefetch=1,                        # flat_idx -> SMEM
                grid=(num_blocks,),
                in_specs=[pl.BlockSpec(memory_space=pl.ANY)],  # table stays in HBM
                out_specs=pl.BlockSpec((T, Dp), lambda i, idx: (i, 0)),
                scratch_shapes=[
                    pltpu.VMEM((2, T, Dp), dtype),            # cross-block double buffer
                    pltpu.SemaphoreType.DMA((2, T)),          # one sem per in-flight row
                ],
            ),
            # Grid steps carry a data dependency (block i's rows are DMA'd
            # during block i-1), so this axis must run sequentially.
            compiler_params=pltpu.CompilerParams(
                dimension_semantics=("arbitrary",),
            ),
            cost_estimate=cost,
        )(idx_chunk, table)
        outs.append(out)

    return outs[0] if len(outs) == 1 else jnp.concatenate(outs, axis=0)


# ----------------------------------------------------------------------------
# indices_to_embeddings(): embedding-table row gather, [B, S] -> [B, S, D].
# ----------------------------------------------------------------------------
@functools.partial(jax.jit, static_argnames=("rows_per_block",))
def indices_to_embeddings(emb_table, indices, *, rows_per_block=None):
    V, D = emb_table.shape
    itemsize = jnp.dtype(emb_table.dtype).itemsize
    orig_shape = indices.shape

    # Lane-dense output stores: pad D to a multiple of 128 (one-time cost per
    # call; padding is sliced off the output below).
    Dp = _round_up(D, _LANE)
    table = emb_table if Dp == D else jnp.pad(emb_table, ((0, 0), (0, Dp - D)))

    # Clip indices so every data-dependent DMA/one-hot source is in-bounds.
    # (nn.Embedding would raise on out-of-range ids; we clamp instead.)
    flat_idx = jnp.clip(indices.reshape(-1).astype(jnp.int32), 0, V - 1)
    N = flat_idx.shape[0]

    # ---- rows-per-block T (static): multiple of 32, VMEM-budget capped ----
    bytes_per_row = Dp * itemsize
    if rows_per_block is None:
        T = min(_MAX_T,
                max(_SUBLANE_MULT, _BUF_BYTES_TARGET // bytes_per_row),
                _round_up(max(N, 1), _SUBLANE_MULT))
    else:
        T = int(rows_per_block)
    T = max(_SUBLANE_MULT, _round_up(T, _SUBLANE_MULT))

    table_bytes = V * Dp * itemsize
    vmem_cap = _vmem_capacity_bytes()
    use_onehot = (V <= _ONEHOT_MAX_V) and (table_bytes <= vmem_cap // 8)
    if use_onehot:
        # Keep the materialized (T, V) one-hot under ~2 MiB of VMEM.
        onehot_cap = max(_SUBLANE_MULT,
                         ((_BUF_BYTES_TARGET // (V * 4)) // _SUBLANE_MULT)
                         * _SUBLANE_MULT)
        T = min(T, onehot_cap)
    # TODO(synk): add a VMEM-resident row-loop gather for mid-size vocabularies
    # (table fits VMEM but V > _ONEHOT_MAX_V); the streaming path covers them
    # correctly today.

    n_pad = _round_up(max(N, 1), T)
    if n_pad != N:
        flat_idx = jnp.concatenate(
            [flat_idx, jnp.zeros((n_pad - N,), jnp.int32)], axis=0)

    if use_onehot:
        out = _gather_onehot_vmem(table, flat_idx, T=T, V=V, Dp=Dp,
                                  vmem_cap=vmem_cap)
    else:
        out = _gather_stream_hbm(table, flat_idx, T=T, Dp=Dp)

    return out[:N, :D].reshape(orig_shape + (D,))


# ----------------------------------------------------------------------------
# Module-like wrapper (glue only) — mirrors captum's InterpretableEmbeddingBase.
# ----------------------------------------------------------------------------
class InterpretableEmbeddingBase:
    def __init__(self, emb_table, full_name="embedding"):
        self.num_embeddings, self.embedding_dim = emb_table.shape
        self.embedding = emb_table
        self.full_name = full_name

    def forward(self, input, *other_inputs, **kwargs):
        # Extra args are accepted and ignored, exactly like the PyTorch module.
        return interpretable_embedding_forward(input)

    def __call__(self, input, *other_inputs, **kwargs):
        return self.forward(input, *other_inputs, **kwargs)

    def indices_to_embeddings(self, indices, rows_per_block=None, **kwargs):
        return indices_to_embeddings(self.embedding, indices,
                                     rows_per_block=rows_per_block)


if __name__ == "__main__":
    key = jax.random.PRNGKey(0)
    k_emb, k_idx, k_x, k_emb2, k_idx2, k_emb3, k_idx3 = jax.random.split(key, 7)

    # ---------------- test 1: forward() identity pass-through ---------------
    V, D = 16, 128
    B, S = 2, 9
    emb_small = jax.random.normal(k_emb, (V, D), dtype=jnp.float32)
    idx_small = jax.random.randint(k_idx, (B, S), 0, V, dtype=jnp.int32)
    x = jax.random.normal(k_x, (B, S, D), dtype=jnp.float32)

    mod = InterpretableEmbeddingBase(emb_small, full_name="word_embeddings")
    y = jax.block_until_ready(mod(x, "other_input_ignored", attention_mask=None))
    np.testing.assert_array_equal(np.asarray(y), np.asarray(x))
    assert y.shape == x.shape and y.dtype == x.dtype

    # ------------- test 2: one-hot VMEM-resident path (small vocab) ---------
    e = jax.block_until_ready(mod.indices_to_embeddings(idx_small))
    np.testing.assert_array_equal(np.asarray(e),
                                  np.asarray(emb_small)[np.asarray(idx_small)])
    assert e.shape == (B, S, D)

    # bf16 table on the same path (exercises sub-32-bit output packing).
    emb_bf16 = emb_small.astype(jnp.bfloat16)
    mod_bf16 = InterpretableEmbeddingBase(emb_bf16)
    e_bf16 = jax.block_until_ready(mod_bf16.indices_to_embeddings(idx_small))
    np.testing.assert_array_equal(np.asarray(e_bf16),
                                  np.asarray(emb_bf16)[np.asarray(idx_small)])

    # ----- test 3: streaming HBM path (large vocab), default + multi-block ---
    V2, D2 = 4096, 256
    B2, S2 = 2, 40
    emb_big = jax.random.normal(k_emb2, (V2, D2), dtype=jnp.float32)
    idx_big = jax.random.randint(k_idx2, (B2, S2), 0, V2, dtype=jnp.int32)
    mod_big = InterpretableEmbeddingBase(emb_big)
    ref_big = np.asarray(emb_big)[np.asarray(idx_big)]

    e_big = jax.block_until_ready(mod_big.indices_to_embeddings(idx_big))
    np.testing.assert_array_equal(np.asarray(e_big), ref_big)

    # Force several grid blocks to exercise the cross-block DMA double buffer.
    e_big_mb = jax.block_until_ready(
        mod_big.indices_to_embeddings(idx_big, rows_per_block=32))
    np.testing.assert_array_equal(np.asarray(e_big_mb), ref_big)

    # -------- test 4: non-128-multiple embedding dim (lane padding path) -----
    V3, D3 = 16, 96
    emb_odd = jax.random.normal(k_emb3, (V3, D3), dtype=jnp.float32)
    idx_odd = jax.random.randint(k_idx3, (1, 5), 0, V3, dtype=jnp.int32)
    mod_odd = InterpretableEmbeddingBase(emb_odd)
    e_odd = jax.block_until_ready(mod_odd.indices_to_embeddings(idx_odd))
    np.testing.assert_array_equal(np.asarray(e_odd),
                                  np.asarray(emb_odd)[np.asarray(idx_odd)])
    assert e_odd.shape == (1, 5, D3)

    print("KERNEL_OK")
</pallas_src>

<mosaic_0001>
module attributes {stable_mosaic.version = 11 : i64} {
  func.func @kernel(%arg0: i32, %arg1: memref<32x1xi32, #tpu.memory_space<vmem>>, %arg2: memref<16x128xf32, #tpu.memory_space<vmem>>, %arg3: memref<32x128xf32, #tpu.memory_space<vmem>>) attributes {dimension_semantics = [#tpu.dimension_semantics<parallel>], iteration_bounds = array<i64: 1>, scalar_prefetch = 0 : i64, scratch_operands = 0 : i64, tpu.core_type = #tpu.core_type<tc>, window_params = [{transform_indices = @transform_0, window_bounds = array<i64: 32, 1>}, {pipeline_mode = #tpu.pipeline_mode<synchronous>, transform_indices = @transform_1, window_bounds = array<i64: 16, 128>}, {transform_indices = @transform_2, window_bounds = array<i64: 32, 128>}]} {
    %c0 = arith.constant 0 : index
    %c0_0 = arith.constant 0 : index
    %0 = vector.load %arg1[%c0, %c0_0] : memref<32x1xi32, #tpu.memory_space<vmem>>, vector<32x1xi32>
    %1 = tpu.iota {dimensions = array<i32: 1>} : vector<32x16xi32>
    %2 = vector.broadcast %0 : vector<32x1xi32> to vector<32x16xi32>
    %3 = arith.cmpi eq, %2, %1 : vector<32x16xi32>
    %4 = arith.extui %3 : vector<32x16xi1> to vector<32x16xi32>
    %5 = arith.sitofp %4 : vector<32x16xi32> to vector<32x16xf32>
    %c0_1 = arith.constant 0 : index
    %c0_2 = arith.constant 0 : index
    %6 = vector.load %arg2[%c0_1, %c0_2] : memref<16x128xf32, #tpu.memory_space<vmem>>, vector<16x128xf32>
    %cst = arith.constant dense<0.000000e+00> : vector<32x128xf32>
    %7 = tpu.matmul %5, %6, %cst {dimension_numbers = #tpu.dot_dimension_numbers<[1], [0], [0], [1], [0, 0, 1, 1], [], []>} : vector<32x16xf32>, vector<16x128xf32>, vector<32x128xf32> -> vector<32x128xf32>
    %c0_3 = arith.constant 0 : index
    %c0_4 = arith.constant 0 : index
    %8 = vector.load %arg3[%c0_3, %c0_4] : memref<32x128xf32, #tpu.memory_space<vmem>>, vector<32x128xf32>
    tpu.vector_store %arg3[%c0_3, %c0_4], %7 {strides = array<i32>} : memref<32x128xf32, #tpu.memory_space<vmem>>, vector<32x128xf32>,
    return
  }
  func.func @transform_0(%arg0: i32) -> (i32, i32) {
    %c0_i32 = arith.constant 0 : i32
    %c0_i32_0 = arith.constant 0 : i32
    return %arg0, %c0_i32 : i32, i32
  }
  func.func @transform_1(%arg0: i32) -> (i32, i32) {
    %c0_i32 = arith.constant 0 : i32
    %c0_i32_0 = arith.constant 0 : i32
    %c0_i32_1 = arith.constant 0 : i32
    return %c0_i32, %c0_i32_0 : i32, i32
  }
  func.func @transform_2(%arg0: i32) -> (i32, i32) {
    %c0_i32 = arith.constant 0 : i32
    %c0_i32_0 = arith.constant 0 : i32
    return %arg0, %c0_i32 : i32, i32
  }
}

</mosaic_0001>

<bundles_post_ra>
// kernel: indices_to_embeddings.1
= control target key start
LH: loop header
LB: loop body
LE: loop exit
PB: predicated region body
PF: predicated region fallthrough
CT: control target
= control target key end

     0   :  { %v183_v0 = vmov 0   ;;  %v15_v8 = vlaneseq  ;;  %vm43_vm0 = vcmask 130048   ;;  %v184_v12 = vmov 0.0   ;;  %s230_s0 = inlined_call_operand.vmem [shape: s32[32,1], index: 0, kind: input, shape index: {}]   ;;  %s231_s1 = inlined_call_operand.vmem [shape: f32[16,128], index: 1, kind: input, shape index: {}]   ;;  %s232_s2 = inlined_call_operand.vmem [shape: f32[32,128], index: 2, kind: output, shape index: {}]  }
   0x1   :  { %182 = vset.pattern.permute.xlu1 %v183_v0  ;;  %181 = vset.pattern.permute.xlu0 %v183_v0  ;;  %v12_v1 = vld [vmem:[%s230_s0 + $0x8] sm:$0xff]  ;;  %v11_v2 = vld [vmem:[%s230_s0] sm:$0xff]  ;;  %v14_v5 = vld [vmem:[%s230_s0 + $0x18] sm:$0xff] }
   0x2   :  { %21 = vperm.xlu1 %182, %v12_v1   ;;  %18 = vperm.xlu0 %181, %v11_v2   ;;  %v41_v3 = vld [vmem:[%s231_s1] sm:$0xff]  ;;  %v42_v4 = vld [vmem:[%s231_s1 + $0x8] sm:$0xff]  ;;  %v13_v6 = vld [vmem:[%s230_s0 + $0x10] sm:$0xff]  ;;  %v16_v9 = vand.u32 127, %v15_v8 }
   0x3   :  { %v173_v7 = vpack.c.bf16 %v42_v4, %v41_v3 }
   0x5   :  { %174 = vmatprep.subr.bf16.mxu0 %v173_v7  ;;  %177 = vmatprep.subr.bf16.mxu1 %v173_v7 }
   0x6   :  { %27 = vperm.xlu1 %182, %v14_v5   ;;  %24 = vperm.xlu0 %181, %v13_v6  }
   0x7   :  { %176 = vmatpush3.bf16.msra.mxu0 %v173_v7  ;;  %178 = vmatpush3.bf16.msra.mxu1 %v173_v7 }
  0x81   :  { %v22_v10 = vpop.permute.xlu1 %21  ;;  %v19_v11 = vpop.permute.xlu0 %18 }
  0x82   :  { %vm30_vm1 = vcmp.eq.s32.totalorder %v22_v10, %v16_v9  ;;  %vm29_vm2 = vcmp.eq.s32.totalorder %v19_v11, %v16_v9 }
  0x83   :  { %v150_v13 = vsel %vm30_vm1, 1.0, %v184_v12  ;;  %v149_v14 = vsel %vm29_vm2, 1.0, %v184_v12 }
  0x84   :  { %167 = vmatprep.mubr.msk.f32.mxu0 %vm43_vm0, %v149_v14 }
  0x85   :  { %v28_v15 = vpop.permute.xlu1 %27  ;;  %168 = vmatmul.mubr.msk.f32.vlgmr.msra.gmra.mrb[0].mxu0 %vm43_vm0, %v150_v13  ;;  %v25_v16 = vpop.permute.xlu0 %24 }
  0x86   :  { %vm32_vm3 = vcmp.eq.s32.totalorder %v28_v15, %v16_v9  ;;  %vm31_vm4 = vcmp.eq.s32.totalorder %v25_v16, %v16_v9 }
  0x87   :  { %v152_v17 = vsel %vm32_vm3, 1.0, %v184_v12  ;;  %v151_v18 = vsel %vm31_vm4, 1.0, %v184_v12 }
  0x88   :  { %170 = vmatprep.mubr.msk.f32.mxu1 %vm43_vm0, %v151_v18 }
  0x89   :  { %171 = vmatmul.mubr.msk.f32.vlgmr.msra.gmra.mrb[0].mxu1 %vm43_vm0, %v152_v17 }
 0x158   :  { %v169_v19 = vpop.f32.mrb[0].mxu0 }
 0x159   :  { %142 = vst [vmem:[%s232_s2 + $0x8] sm:$0xff] %v169_v19  ;;  %v122_v20 = vpop.f32.mrb[1].mxu0 }
 0x15a   :  { %141 = vst [vmem:[%s232_s2] sm:$0xff] %v122_v20 }
 0x15c   :  { %v172_v21 = vpop.f32.mrb[0].mxu1 }
 0x15d   :  { %144 = vst [vmem:[%s232_s2 + $0x18] sm:$0xff] %v172_v21  ;;  %v132_v22 = vpop.f32.mrb[1].mxu1 }
 0x15e   :  { %143 = vst [vmem:[%s232_s2 + $0x10] sm:$0xff] %v132_v22 }

</bundles_post_ra>
